<compile_context>
chip_gen: v7x
topology: tpu7x:2x2x1
jax: 0.10.0
libtpu: 0.0.40
codegen_flags: <defaults>
</compile_context>

<pallas_src>
import math

import jax
import jax.numpy as jnp
from jax import lax
from jax.experimental import pallas as pl
from jax.experimental.pallas import tpu as pltpu

LOG_SQRT_2PI = 0.5 * math.log(2.0 * math.pi)

# ---------------- model dimensions (spec) ----------------
OBS_DIM = 32          # observation_space.shape[0] == encoder.output_size (oracle mode)
LATENT_SIZE_NET = 32  # spec.latent_size_net
OUT_POLICY = 16       # spec.output_size_policy
OUT_VALUE = 1         # spec.output_size_value
ACTION_DIM = 4        # action_space.shape[0]
BATCH = 8

# ---------------- packed-parameter slab layout ----------------
LANES = 128
R_W1 = 0                      # rows [0, 32):    fused first-layer weight, 128-lane padded
R_W2 = R_W1 + OBS_DIM         # rows [32, 160):  block-diagonal second-layer weight
R_WA = R_W2 + LANES           # rows [160, 288): padded action-head weight
R_CONST = R_WA + LANES        # rows [288, 296): biases, log_std, action-lane mask
SLAB_ROWS = R_CONST + 8       # 296 (multiple of 8)

# output slab columns
COL_VALUE = 0
COL_LOGP = 1
COL_ENT = 2


def ppo_critic_kernel(obs_ref, act_ref, p_ref, out_ref):
    obs = obs_ref[...]                      # (TB, OBS_DIM)
    act = act_ref[...]                      # (TB, 128)  action in lanes [0, ACTION_DIM)

    # static, aligned slices of the resident parameter slab (free views)
    w1 = p_ref[R_W1:R_W1 + OBS_DIM, :]      # (32, 128)  [:, :32]=w1p  [:, 32:64]=w1v
    w2 = p_ref[R_W2:R_W2 + LANES, :]        # (128,128)  block-diag: w2p -> cols 0..15, w2v -> col 16
    wa = p_ref[R_WA:R_WA + LANES, :]        # (128,128)  rows 0..15 / cols 0..3 = action head
    consts = p_ref[R_CONST:R_CONST + 8, :]  # (8, 128)

    b1 = consts[0:1, :]                     # fused first-layer bias
    b2 = consts[1:2, :]                     # fused second-layer bias
    ba = consts[2:3, :]                     # action-head bias
    log_std = consts[3:4, :]                # log_std in lanes [0, ACTION_DIM), 0 elsewhere
    amask = consts[4:5, :]                  # 1.0 on valid action lanes, 0.0 elsewhere

    # fused first layer: h[:, :32] = relu(obs@w1p + b1p), h[:, 32:64] = relu(obs@w1v + b1v)
    h = jnp.maximum(jnp.dot(obs, w1, preferred_element_type=jnp.float32) + b1, 0.0)

    # fused block-diagonal second layer: pv[:, :16] = policy, pv[:, 16] = value
    pv = jnp.dot(h, w2, preferred_element_type=jnp.float32) + b2

    # action head (lane-padded): mean in lanes [0, ACTION_DIM), 0 elsewhere
    mean = jnp.dot(pv, wa, preferred_element_type=jnp.float32) + ba

    # diagonal Gaussian log-prob (divide-free): 1/(2*sigma^2) = 0.5*exp(-2*log_std)
    inv_two_var = (0.5 * jnp.exp(-2.0 * log_std)) * amask          # EUP exp, masked lanes -> 0
    diff = act - mean                                              # padded lanes are 0 - 0 = 0
    lp_elem = -(diff * diff) * inv_two_var - (log_std + LOG_SQRT_2PI) * amask
    logp = jnp.sum(lp_elem, axis=-1, keepdims=True)                # (TB, 1)

    value = pv[:, OUT_POLICY:OUT_POLICY + OUT_VALUE]               # (TB, 1)

    # entropy of diagonal Gaussian (batch-independent)
    ent = jnp.sum((0.5 + LOG_SQRT_2PI + log_std) * amask, axis=-1, keepdims=True)  # (1, 1)

    # single lane-dense output slab: col0=value, col1=logp, col2=entropy, rest 0
    lane = lax.broadcasted_iota(jnp.int32, out_ref.shape, 1)
    out = jnp.where(lane == COL_VALUE, value,
          jnp.where(lane == COL_LOGP, logp,
          jnp.where(lane == COL_ENT, ent, 0.0)))
    out_ref[...] = out


def pack_params(params):
    """Pack the 11 parameter arrays into one (SLAB_ROWS, 128) f32 slab."""
    (w1p, b1p, w2p, b2p, w1v, b1v, w2v, b2v, wa, ba, log_std) = params
    slab = jnp.zeros((SLAB_ROWS, LANES), dtype=jnp.float32)

    # fused first-layer weight
    slab = slab.at[R_W1:R_W1 + OBS_DIM, 0:LATENT_SIZE_NET].set(w1p)
    slab = slab.at[R_W1:R_W1 + OBS_DIM, LATENT_SIZE_NET:2 * LATENT_SIZE_NET].set(w1v)
    # block-diagonal second-layer weight
    slab = slab.at[R_W2:R_W2 + LATENT_SIZE_NET, 0:OUT_POLICY].set(w2p)
    slab = slab.at[R_W2 + LATENT_SIZE_NET:R_W2 + 2 * LATENT_SIZE_NET,
                   OUT_POLICY:OUT_POLICY + OUT_VALUE].set(w2v)
    # padded action-head weight
    slab = slab.at[R_WA:R_WA + OUT_POLICY, 0:ACTION_DIM].set(wa)
    # constants block
    slab = slab.at[R_CONST + 0, 0:LATENT_SIZE_NET].set(jnp.reshape(b1p, (-1,)))
    slab = slab.at[R_CONST + 0, LATENT_SIZE_NET:2 * LATENT_SIZE_NET].set(jnp.reshape(b1v, (-1,)))
    slab = slab.at[R_CONST + 1, 0:OUT_POLICY].set(jnp.reshape(b2p, (-1,)))
    slab = slab.at[R_CONST + 1, OUT_POLICY:OUT_POLICY + OUT_VALUE].set(jnp.reshape(b2v, (-1,)))
    slab = slab.at[R_CONST + 2, 0:ACTION_DIM].set(jnp.reshape(ba, (-1,)))
    slab = slab.at[R_CONST + 3, 0:ACTION_DIM].set(jnp.reshape(log_std, (-1,)))
    slab = slab.at[R_CONST + 4, 0:ACTION_DIM].set(1.0)
    return slab


def _round_up(x, m):
    return ((x + m - 1) // m) * m


def actor_critic_critic(observation, action, params, *, tb=None):
    """Pallas equivalent of MODEL_ACTOR_CRITIC.critic(observation, action).

    Returns (value_output (B, OUT_VALUE), log_prob (B, 1), entropy (B,)).
    """
    b = observation.shape[0]
    slab = pack_params(params)

    # batch tiling: sublane-aligned rows, tiles up to 256 rows, grid over batch
    bp = _round_up(b, 8)
    if tb is None:
        tb = min(256, bp)
    bp = _round_up(bp, tb)
    grid = (bp // tb,)

    obs_p = jnp.zeros((bp, OBS_DIM), jnp.float32).at[:b, :].set(observation.astype(jnp.float32))
    act_p = jnp.zeros((bp, LANES), jnp.float32).at[:b, :ACTION_DIM].set(action.astype(jnp.float32))

    flops = 2 * bp * (OBS_DIM * LANES + LANES * LANES + LANES * LANES)
    bytes_accessed = 4 * (bp * (OBS_DIM + LANES + LANES) + SLAB_ROWS * LANES)
    cost = pl.CostEstimate(flops=flops,
                           transcendentals=grid[0] * LANES,
                           bytes_accessed=bytes_accessed)

    out = pl.pallas_call(
        ppo_critic_kernel,
        out_shape=jax.ShapeDtypeStruct((bp, LANES), jnp.float32),
        grid=grid,
        in_specs=[
            pl.BlockSpec((tb, OBS_DIM), lambda i: (i, 0)),
            pl.BlockSpec((tb, LANES), lambda i: (i, 0)),
            pl.BlockSpec((SLAB_ROWS, LANES), lambda i: (0, 0)),   # resident weight slab
        ],
        out_specs=pl.BlockSpec((tb, LANES), lambda i: (i, 0)),
        compiler_params=pltpu.CompilerParams(dimension_semantics=("parallel",)),
        cost_estimate=cost,
    )(obs_p, act_p, slab)

    value = out[:b, COL_VALUE:COL_VALUE + OUT_VALUE]
    logp = out[:b, COL_LOGP:COL_LOGP + 1]
    ent = out[:b, COL_ENT]
    return value, logp, ent


def init_params(key):
    """Deterministic synthetic parameter init (kaiming-ish normals, zero biases)."""
    ks = jax.random.split(key, 5)

    def linear(k, fan_in, fan_out):
        scale = math.sqrt(2.0 / fan_out)   # kaiming_normal_, mode='fan_out'
        w = scale * jax.random.normal(k, (fan_in, fan_out), dtype=jnp.float32)
        b = jnp.zeros((1, fan_out), dtype=jnp.float32)
        return w, b

    w1p, b1p = linear(ks[0], OBS_DIM, LATENT_SIZE_NET)
    w2p, b2p = linear(ks[1], LATENT_SIZE_NET, OUT_POLICY)
    w1v, b1v = linear(ks[2], OBS_DIM, LATENT_SIZE_NET)
    w2v, b2v = linear(ks[3], LATENT_SIZE_NET, OUT_VALUE)
    wa, ba = linear(ks[4], OUT_POLICY, ACTION_DIM)
    log_std = jnp.zeros((1, ACTION_DIM), dtype=jnp.float32)   # log_std_init = 0.0
    return (w1p, b1p, w2p, b2p, w1v, b1v, w2v, b2v, wa, ba, log_std)


def reference_critic(observation, action, params):
    (w1p, b1p, w2p, b2p, w1v, b1v, w2v, b2v, wa, ba, log_std) = params
    h_p = jnp.maximum(observation @ w1p + b1p, 0.0)
    policy = h_p @ w2p + b2p
    h_v = jnp.maximum(observation @ w1v + b1v, 0.0)
    value = h_v @ w2v + b2v
    mean = policy @ wa + ba
    std = jnp.exp(log_std)
    lp = -((action - mean) ** 2) / (2.0 * std * std) - log_std - LOG_SQRT_2PI
    logp = jnp.sum(lp, axis=-1, keepdims=True)
    ent = jnp.broadcast_to(jnp.sum(0.5 + LOG_SQRT_2PI + log_std, axis=-1),
                           (observation.shape[0],))
    return value, logp, ent


if __name__ == "__main__":
    key = jax.random.PRNGKey(0)
    k_obs, k_act, k_par = jax.random.split(key, 3)

    observation = jax.random.normal(k_obs, (BATCH, OBS_DIM), dtype=jnp.float32)
    action = jax.random.normal(k_act, (BATCH, ACTION_DIM), dtype=jnp.float32)
    params = init_params(k_par)

    value, logp, ent = actor_critic_critic(observation, action, params)
    jax.block_until_ready((value, logp, ent))

    # sanity-check against a pure-JAX reference of the same math
    v_ref, lp_ref, ent_ref = reference_critic(observation, action, params)
    assert value.shape == (BATCH, OUT_VALUE) and logp.shape == (BATCH, 1) and ent.shape == (BATCH,)
    assert jnp.allclose(value, v_ref, atol=1e-4), "value mismatch"
    assert jnp.allclose(logp, lp_ref, atol=1e-4), "log_prob mismatch"
    assert jnp.allclose(ent, ent_ref, atol=1e-5), "entropy mismatch"

    print("KERNEL_OK")
</pallas_src>

<mosaic_0001>
module attributes {stable_mosaic.version = 11 : i64} {
  func.func @ppo_critic_kernel(%arg0: i32, %arg1: memref<8x32xf32, #tpu.memory_space<vmem>>, %arg2: memref<8x128xf32, #tpu.memory_space<vmem>>, %arg3: memref<296x128xf32, #tpu.memory_space<vmem>>, %arg4: memref<8x128xf32, #tpu.memory_space<vmem>>) attributes {dimension_semantics = [#tpu.dimension_semantics<parallel>], iteration_bounds = array<i64: 1>, scalar_prefetch = 0 : i64, scratch_operands = 0 : i64, tpu.core_type = #tpu.core_type<tc>, window_params = [{transform_indices = @transform_0, window_bounds = array<i64: 8, 32>}, {transform_indices = @transform_1, window_bounds = array<i64: 8, 128>}, {pipeline_mode = #tpu.pipeline_mode<synchronous>, transform_indices = @transform_2, window_bounds = array<i64: 296, 128>}, {transform_indices = @transform_3, window_bounds = array<i64: 8, 128>}]} {
    %c0 = arith.constant 0 : index
    %c0_0 = arith.constant 0 : index
    %0 = vector.load %arg1[%c0, %c0_0] : memref<8x32xf32, #tpu.memory_space<vmem>>, vector<8x32xf32>
    %c0_1 = arith.constant 0 : index
    %c0_2 = arith.constant 0 : index
    %1 = vector.load %arg2[%c0_1, %c0_2] : memref<8x128xf32, #tpu.memory_space<vmem>>, vector<8x128xf32>
    %c0_3 = arith.constant 0 : index
    %c0_4 = arith.constant 0 : index
    %2 = vector.load %arg3[%c0_3, %c0_4] : memref<296x128xf32, #tpu.memory_space<vmem>>, vector<32x128xf32>
    %c32 = arith.constant 32 : index
    %c0_5 = arith.constant 0 : index
    %3 = vector.load %arg3[%c32, %c0_5] : memref<296x128xf32, #tpu.memory_space<vmem>>, vector<128x128xf32>
    %c160 = arith.constant 160 : index
    %c0_6 = arith.constant 0 : index
    %4 = vector.load %arg3[%c160, %c0_6] : memref<296x128xf32, #tpu.memory_space<vmem>>, vector<128x128xf32>
    %c288 = arith.constant 288 : index
    %c0_7 = arith.constant 0 : index
    %5 = vector.load %arg3[%c288, %c0_7] : memref<296x128xf32, #tpu.memory_space<vmem>>, vector<8x128xf32>
    %6 = vector.extract_strided_slice %5 {offsets = [0, 0], sizes = [1, 128], strides = [1, 1]} : vector<8x128xf32> to vector<1x128xf32>
    %7 = vector.extract_strided_slice %5 {offsets = [1, 0], sizes = [1, 128], strides = [1, 1]} : vector<8x128xf32> to vector<1x128xf32>
    %8 = vector.extract_strided_slice %5 {offsets = [2, 0], sizes = [1, 128], strides = [1, 1]} : vector<8x128xf32> to vector<1x128xf32>
    %9 = vector.extract_strided_slice %5 {offsets = [3, 0], sizes = [1, 128], strides = [1, 1]} : vector<8x128xf32> to vector<1x128xf32>
    %10 = vector.extract_strided_slice %5 {offsets = [4, 0], sizes = [1, 128], strides = [1, 1]} : vector<8x128xf32> to vector<1x128xf32>
    %cst = arith.constant dense<0.000000e+00> : vector<8x128xf32>
    %11 = tpu.matmul %0, %2, %cst {dimension_numbers = #tpu.dot_dimension_numbers<[1], [0], [0], [1], [0, 0, 1, 1], [], []>} : vector<8x32xf32>, vector<32x128xf32>, vector<8x128xf32> -> vector<8x128xf32>
    %12 = vector.broadcast %6 : vector<1x128xf32> to vector<8x128xf32>
    %13 = arith.addf %11, %12 : vector<8x128xf32>
    %cst_8 = arith.constant 0.000000e+00 : f32
    %14 = vector.broadcast %cst_8 : f32 to vector<8x128xf32>
    %15 = arith.maximumf %13, %14 : vector<8x128xf32>
    %cst_9 = arith.constant dense<0.000000e+00> : vector<8x128xf32>
    %16 = tpu.matmul %15, %3, %cst_9 {dimension_numbers = #tpu.dot_dimension_numbers<[1], [0], [0], [1], [0, 0, 1, 1], [], []>} : vector<8x128xf32>, vector<128x128xf32>, vector<8x128xf32> -> vector<8x128xf32>
    %17 = vector.broadcast %7 : vector<1x128xf32> to vector<8x128xf32>
    %18 = arith.addf %16, %17 : vector<8x128xf32>
    %cst_10 = arith.constant dense<0.000000e+00> : vector<8x128xf32>
    %19 = tpu.matmul %18, %4, %cst_10 {dimension_numbers = #tpu.dot_dimension_numbers<[1], [0], [0], [1], [0, 0, 1, 1], [], []>} : vector<8x128xf32>, vector<128x128xf32>, vector<8x128xf32> -> vector<8x128xf32>
    %20 = vector.broadcast %8 : vector<1x128xf32> to vector<8x128xf32>
    %21 = arith.addf %19, %20 : vector<8x128xf32>
    %cst_11 = arith.constant -2.000000e+00 : f32
    %22 = vector.broadcast %cst_11 : f32 to vector<1x128xf32>
    %23 = arith.mulf %22, %9 : vector<1x128xf32>
    %24 = math.exp %23 : vector<1x128xf32>
    %cst_12 = arith.constant 5.000000e-01 : f32
    %25 = vector.broadcast %cst_12 : f32 to vector<1x128xf32>
    %26 = arith.mulf %25, %24 : vector<1x128xf32>
    %27 = arith.mulf %26, %10 : vector<1x128xf32>
    %28 = arith.subf %1, %21 : vector<8x128xf32>
    %29 = arith.mulf %28, %28 : vector<8x128xf32>
    %cst_13 = arith.constant 0.000000e+00 : f32
    %30 = vector.broadcast %cst_13 : f32 to vector<8x128xf32>
    %31 = arith.subf %30, %29 : vector<8x128xf32>
    %32 = vector.broadcast %27 : vector<1x128xf32> to vector<8x128xf32>
    %33 = arith.mulf %31, %32 : vector<8x128xf32>
    %cst_14 = arith.constant 0.918938517 : f32
    %34 = vector.broadcast %cst_14 : f32 to vector<1x128xf32>
    %35 = arith.addf %9, %34 : vector<1x128xf32>
    %36 = arith.mulf %35, %10 : vector<1x128xf32>
    %37 = vector.broadcast %36 : vector<1x128xf32> to vector<8x128xf32>
    %38 = arith.subf %33, %37 : vector<8x128xf32>
    %cst_15 = arith.constant dense<0.000000e+00> : vector<8xf32>
    %39 = vector.multi_reduction <add>, %38, %cst_15 [1] : vector<8x128xf32> to vector<8xf32>
    %40 = vector.shape_cast %39 : vector<8xf32> to vector<8x1xf32>
    %41 = vector.extract_strided_slice %18 {offsets = [0, 16], sizes = [8, 1], strides = [1, 1]} : vector<8x128xf32> to vector<8x1xf32>
    %cst_16 = arith.constant 1.41893852 : f32
    %42 = vector.broadcast %cst_16 : f32 to vector<1x128xf32>
    %43 = arith.addf %42, %9 : vector<1x128xf32>
    %44 = arith.mulf %43, %10 : vector<1x128xf32>
    %cst_17 = arith.constant dense<0.000000e+00> : vector<1xf32>
    %45 = vector.multi_reduction <add>, %44, %cst_17 [1] : vector<1x128xf32> to vector<1xf32>
    %46 = vector.shape_cast %45 : vector<1xf32> to vector<1x1xf32>
    %47 = tpu.iota {dimensions = array<i32: 1>} : vector<8x128xi32>
    %c0_i32 = arith.constant 0 : i32
    %48 = vector.broadcast %c0_i32 : i32 to vector<8x128xi32>
    %49 = arith.cmpi eq, %47, %48 : vector<8x128xi32>
    %c1_i32 = arith.constant 1 : i32
    %50 = vector.broadcast %c1_i32 : i32 to vector<8x128xi32>
    %51 = arith.cmpi eq, %47, %50 : vector<8x128xi32>
    %c2_i32 = arith.constant 2 : i32
    %52 = vector.broadcast %c2_i32 : i32 to vector<8x128xi32>
    %53 = arith.cmpi eq, %47, %52 : vector<8x128xi32>
    %cst_18 = arith.constant 0.000000e+00 : f32
    %54 = vector.shape_cast %46 : vector<1x1xf32> to vector<1x1xf32>
    %55 = vector.broadcast %54 : vector<1x1xf32> to vector<8x128xf32>
    %56 = vector.broadcast %cst_18 : f32 to vector<8x128xf32>
    %57 = arith.select %53, %55, %56 : vector<8x128xi1>, vector<8x128xf32>
    %58 = vector.shape_cast %40 : vector<8x1xf32> to vector<8x1xf32>
    %59 = vector.broadcast %58 : vector<8x1xf32> to vector<8x128xf32>
    %60 = arith.select %51, %59, %57 : vector<8x128xi1>, vector<8x128xf32>
    %61 = vector.shape_cast %41 : vector<8x1xf32> to vector<8x1xf32>
    %62 = vector.broadcast %61 : vector<8x1xf32> to vector<8x128xf32>
    %63 = arith.select %49, %62, %60 : vector<8x128xi1>, vector<8x128xf32>
    %c0_19 = arith.constant 0 : index
    %c0_20 = arith.constant 0 : index
    %64 = vector.load %arg4[%c0_19, %c0_20] : memref<8x128xf32, #tpu.memory_space<vmem>>, vector<8x128xf32>
    tpu.vector_store %arg4[%c0_19, %c0_20], %63 {strides = array<i32>} : memref<8x128xf32, #tpu.memory_space<vmem>>, vector<8x128xf32>,
    return
  }
  func.func @transform_0(%arg0: i32) -> (i32, i32) {
    %c0_i32 = arith.constant 0 : i32
    %c0_i32_0 = arith.constant 0 : i32
    return %arg0, %c0_i32 : i32, i32
  }
  func.func @transform_1(%arg0: i32) -> (i32, i32) {
    %c0_i32 = arith.constant 0 : i32
    %c0_i32_0 = arith.constant 0 : i32
    return %arg0, %c0_i32 : i32, i32
  }
  func.func @transform_2(%arg0: i32) -> (i32, i32) {
    %c0_i32 = arith.constant 0 : i32
    %c0_i32_0 = arith.constant 0 : i32
    %c0_i32_1 = arith.constant 0 : i32
    return %c0_i32, %c0_i32_0 : i32, i32
  }
  func.func @transform_3(%arg0: i32) -> (i32, i32) {
    %c0_i32 = arith.constant 0 : i32
    %c0_i32_0 = arith.constant 0 : i32
    return %arg0, %c0_i32 : i32, i32
  }
}

</mosaic_0001>

<bundles_post_ra>
// kernel: tpu_custom_call.1
= control target key start
LH: loop header
LB: loop body
LE: loop exit
PB: predicated region body
PF: predicated region fallthrough
CT: control target
= control target key end

     0   :  { %8 = vsyncpa [#allocation3], 0  ;;  %s765_s0 = inlined_call_operand.hbm [shape: f32[8,32], index: 0, kind: input, shape index: {}]   ;;  %s766_s1 = inlined_call_operand.hbm [shape: f32[8,128], index: 1, kind: input, shape index: {}]   ;;  %s767_s2 = inlined_call_operand.hbm [shape: f32[296,128], index: 2, kind: input, shape index: {}]   ;;  %s768_s3 = inlined_call_operand.hbm [shape: f32[8,128], index: 3, kind: output, shape index: {}]  }
   0x1   :  { %9 = vsyncpa [#allocation6], 0 }
   0x2   :  { %10 = vsyncpa [#allocation4], 0  ;;  %s666_s12 = smov [#allocation5]   ;;  %s667_s14 = smov [#allocation2]  }
   0x3   :  { %s27_s13 = sshll.u32 %s666_s12, 4  ;;  %s17_s15 = sshll.u32 %s667_s14, 4  ;;  %s28_s13 = int_to_ptr.vmem [resolvable:$true] %s27_s13  ;;  %s18_s15 = int_to_ptr.vmem [resolvable:$true] %s17_s15 }
   0x4   :  { %s572_s18 = scalar_lea.hbm %s766_s1, 128 }
   0x5   :  { %p573_p0 = scmp.ne.s32.totalorder %s766_s1, %s572_s18  ;;  %p576_p1 = scmp.lt.u32.totalorder %s572_s18, %s766_s1 }
   0x7   :  { %p578_p2 = pnand %p576_p1, %p573_p0 }
   0x9   :  { %581 = shalt.err (!%p578_p2)
}
   0xa   :  { %s582_s23 = scalar_lea.vmem %s28_s13, 128  ;;  %p587_p4 = scmp.lt.s32.totalorder %s28_s13, %s28_s13 }
   0xb   :  { %p583_p3 = scmp.ne.s32.totalorder %s28_s13, %s582_s23  ;;  %p588_p5 = scmp.lt.s32.totalorder %s582_s23, %s582_s23 }
   0xd   :  { %p589_p6 = por %p588_p5, %p587_p4 }
   0xf   :  { %p590_p7 = pnand %p589_p6, %p583_p3 }
  0x11   :  { %593 = shalt.err (!%p590_p7)
}
  0x12   :  { %30 = dma.hbm_to_vmem [thread:$0]  %s766_s1, 128, %s28_s13, [#allocation6]  }
  0x13   :  { %s594_s28 = scalar_lea.hbm %s765_s0, 128 }
  0x14   :  { %p595_p8 = scmp.ne.s32.totalorder %s765_s0, %s594_s28  ;;  %p598_p9 = scmp.lt.u32.totalorder %s594_s28, %s765_s0 }
  0x16   :  { %p600_p10 = pnand %p598_p9, %p595_p8 }
  0x18   :  { %603 = shalt.err (!%p600_p10)
}
  0x19   :  { %s604_s6 = scalar_lea.vmem %s18_s15, 128  ;;  %p609_p12 = scmp.lt.s32.totalorder %s18_s15, %s18_s15 }
  0x1a   :  { %p605_p11 = scmp.ne.s32.totalorder %s18_s15, %s604_s6  ;;  %p610_p13 = scmp.lt.s32.totalorder %s604_s6, %s604_s6 }
  0x1c   :  { %p611_p0 = por %p610_p13, %p609_p12 }
  0x1e   :  { %p612_p1 = pnand %p611_p0, %p605_p11 }
  0x20   :  { %615 = shalt.err (!%p612_p1)
}
  0x21   :  { %20 = dma.hbm_to_vmem [thread:$0]  %s765_s0, 128, %s18_s15, [#allocation3]  }
  0x22   :  { %s668_s8 = smov [#allocation7]   ;;  %s616_s12 = scalar_lea.hbm %s767_s2, 4736 }
  0x23   :  { %s36_s9 = sshll.u32 %s668_s8, 4  ;;  %p617_p2 = scmp.ne.s32.totalorder %s767_s2, %s616_s12  ;;  %s37_s9 = int_to_ptr.vmem [resolvable:$true] %s36_s9 }
  0x24   :  { %p620_p3 = scmp.lt.u32.totalorder %s616_s12, %s767_s2 }
  0x26   :  { %p622_p4 = pnand %p620_p3, %p617_p2 }
  0x28   :  { %625 = shalt.err (!%p622_p4)
}
  0x29   :  { %s626_s18 = scalar_lea.vmem %s37_s9, 4736  ;;  %p631_p6 = scmp.lt.s32.totalorder %s37_s9, %s37_s9 }
  0x2a   :  { %p627_p5 = scmp.ne.s32.totalorder %s37_s9, %s626_s18  ;;  %p632_p7 = scmp.lt.s32.totalorder %s626_s18, %s626_s18 }
  0x2c   :  { %p633_p8 = por %p632_p7, %p631_p6 }
  0x2e   :  { %p634_p9 = pnand %p633_p8, %p627_p5 }
  0x30   :  { %637 = shalt.err (!%p634_p9)
}
  0x31   :  { %s669_s0 = smov 128   ;;  %s670_s15 = smov 8  }
  0x32   :  { %42 = dma.hbm_to_vmem [thread:$0]  %s767_s2, 4736, %s37_s9, [#allocation6], %s669_s0, %s669_s0, %s670_s15  }
  0x33   :  { %660 = dma.done.wait [#allocation3], 128  }
  0x34   :  { %661 = vsyncadd [#allocation3], 4294967168 }
  0x35   :  { %662 = dma.done.wait [#allocation6], 4864  }
  0x36   :  { %663 = vsyncadd [#allocation6], 4294962432  ;;  %v671_v0 = vmov 0.0|0.0   ;;  %vm672_vm0 = vmmov 0   ;;  %v673_v1 = vmov 0.0   ;;  %v54_v2 = vld [vmem:[#allocation7] sm:$0xff]  ;;  %v91_v54 = vlaneseq }
  0x37   :  { %504 = vmatprep.subr.bf16.mxu0 %v671_v0  ;;  %431 = vmatprep.mubr.msk.f32.mxu0 %vm672_vm0, %v673_v1  ;;  %v55_v3 = vld [vmem:[#allocation7 + $0x8] sm:$0xff]  ;;  %v56_v4 = vld [vmem:[#allocation7 + $0x10] sm:$0xff]  ;;  %v57_v6 = vld [vmem:[#allocation7 + $0x18] sm:$0xff]  ;;  %vm95_vm1 = vcmask 261120   ;;  %vm345_vm2 = vcmask 1043459   ;;  %s675_s2 = smov [#allocation8]  }
  0x38   :  { %510 = vmatprep.subr.bf16.mxu1 %v671_v0  ;;  %466 = vmatprep.mubr.msk.f32.mxu1 %vm672_vm0, %v673_v1  ;;  %v505_v5 = vpack.c.bf16 %v55_v3, %v54_v2  ;;  %v58_v7 = vld [vmem:[#allocation7 + $0x20] sm:$0xff]  ;;  %v59_v8 = vld [vmem:[#allocation7 + $0x28] sm:$0xff]  ;;  %v60_v9 = vld [vmem:[#allocation7 + $0x30] sm:$0xff]  ;;  %v508_v11 = vpack.c.bf16 %v57_v6, %v56_v4  ;;  %v92_v55 = vshrl.u32 %v91_v54, 7  ;;  %v674_v3 = vmov 16   ;;  %s373_s21 = sshll.u32 %s675_s2, 4  ;;  %s374_s21 = int_to_ptr.vmem [resolvable:$true] %s373_s21 }
  0x39   :  { %v61_v10 = vld [vmem:[#allocation7 + $0x38] sm:$0xff]  ;;  %v511_v12 = vpack.c.bf16 %v59_v8, %v58_v7  ;;  %v62_v14 = vld [vmem:[#allocation7 + $0x40] sm:$0xff]  ;;  %v63_v15 = vld [vmem:[#allocation7 + $0x48] sm:$0xff]  ;;  %568 = vset.pattern.permute.xlu1 %v674_v3  ;;  %569 = vset.pattern.permute.xlu0 %v674_v3  ;;  %s638_s22 = scalar_lea.vmem %s374_s21, 128  ;;  %p643_p11 = scmp.lt.s32.totalorder %s374_s21, %s374_s21 }
  0x3a   :  { %506 = vmatpush3.bf16.msra.mxu0 %v505_v5  ;;  %v514_v13 = vpack.c.bf16 %v61_v10, %v60_v9  ;;  %v52_v16 = vld [vmem:[#allocation2] sm:$0xff]  ;;  %v517_v17 = vpack.c.bf16 %v63_v15, %v62_v14  ;;  %v65_v19 = vld [vmem:[#allocation7 + $0x58] sm:$0xff]  ;;  %v66_v21 = vld [vmem:[#allocation7 + $0x60] sm:$0xff]  ;;  %v93_v56 = vsub.s32 0, %v92_v55  ;;  %v172_v4 = vsub.s32 1, %v92_v55  ;;  %p639_p10 = scmp.ne.s32.totalorder %s374_s21, %s638_s22  ;;  %p644_p12 = scmp.lt.s32.totalorder %s638_s22, %s638_s22 }
  0x3b   :  { %507 = vmatprep.subr.bf16.mxu0 %v671_v0  ;;  %512 = vmatpush3.bf16.msra.mxu1 %v511_v12  ;;  %v64_v18 = vld [vmem:[#allocation7 + $0x50] sm:$0xff]  ;;  %v67_v22 = vld [vmem:[#allocation7 + $0x68] sm:$0xff]  ;;  %v69_v25 = vld [vmem:[#allocation7 + $0x78] sm:$0xff]  ;;  %v246_v14 = vsub.s32 2, %v92_v55 }
  0x3c   :  { %513 = vmatprep.subr.bf16.mxu1 %v671_v0  ;;  %v520_v20 = vpack.c.bf16 %v65_v19, %v64_v18  ;;  %v523_v23 = vpack.c.bf16 %v67_v22, %v66_v21  ;;  %v68_v24 = vld [vmem:[#allocation7 + $0x70] sm:$0xff]  ;;  %v70_v27 = vld [vmem:[#allocation7 + $0x80] sm:$0xff]  ;;  %v71_v28 = vld [vmem:[#allocation7 + $0x88] sm:$0xff]  ;;  %p645_p13 = por %p644_p12, %p643_p11 }
  0x3d   :  { %v526_v26 = vpack.c.bf16 %v69_v25, %v68_v24  ;;  %v529_v29 = vpack.c.bf16 %v71_v28, %v70_v27  ;;  %v72_v30 = vld [vmem:[#allocation7 + $0x90] sm:$0xff]  ;;  %v73_v31 = vld [vmem:[#allocation7 + $0x98] sm:$0xff]  ;;  %v74_v33 = vld [vmem:[#allocation7 + $0xa0] sm:$0xff]  ;;  %v331_v24 = vsub.s32 3, %v92_v55 }
  0x3e   :  { %509 = vmatpush3.bf16.msra.mxu0 %v508_v11  ;;  %v532_v32 = vpack.c.bf16 %v73_v31, %v72_v30  ;;  %v75_v34 = vld [vmem:[#allocation7 + $0xa8] sm:$0xff]  ;;  %v76_v35 = vld [vmem:[#allocation7 + $0xb0] sm:$0xff]  ;;  %v77_v37 = vld [vmem:[#allocation7 + $0xb8] sm:$0xff]  ;;  %p646_p0 = pnand %p645_p13, %p639_p10 }
  0x3f   :  { %534 = vmatprep.subr.bf16.mxu0 %v671_v0  ;;  %515 = vmatpush3.bf16.msra.mxu1 %v514_v13  ;;  %v535_v36 = vpack.c.bf16 %v75_v34, %v74_v33  ;;  %v538_v38 = vpack.c.bf16 %v77_v37, %v76_v35  ;;  %v78_v39 = vld [vmem:[#allocation7 + $0xc0] sm:$0xff]  ;;  %v79_v40 = vld [vmem:[#allocation7 + $0xc8] sm:$0xff]  ;;  %v80_v42 = vld [vmem:[#allocation7 + $0xd0] sm:$0xff]  ;;  %v350_v33 = vand.u32 127, %v91_v54 }
  0x40   :  { %516 = vmatprep.subr.bf16.mxu1 %v671_v0  ;;  %v541_v41 = vpack.c.bf16 %v79_v40, %v78_v39  ;;  %v81_v43 = vld [vmem:[#allocation7 + $0xd8] sm:$0xff]  ;;  %v82_v45 = vld [vmem:[#allocation7 + $0xe0] sm:$0xff]  ;;  %v83_v46 = vld [vmem:[#allocation7 + $0xe8] sm:$0xff] }
  0x41   :  { %432 = vmatmul.mubr.msk.f32.vlgmr.msra.gmra.mrb[0].mxu0 %vm95_vm1, %v52_v16  ;;  %v544_v44 = vpack.c.bf16 %v81_v43, %v80_v42  ;;  %v547_v47 = vpack.c.bf16 %v83_v46, %v82_v45  ;;  %v84_v48 = vld [vmem:[#allocation7 + $0xf0] sm:$0xff]  ;;  %v85_v49 = vld [vmem:[#allocation7 + $0xf8] sm:$0xff]  ;;  %v86_v51 = vld [vmem:[#allocation7 + $0x100] sm:$0xff]  ;;  %vm353_vm3 = vcmp.eq.s32.totalorder %v350_v33, 2  ;;  %vm352_vm4 = vcmp.eq.s32.totalorder %v350_v33, 1 }
  0x42   :  { %501 = vmatprep.mubr.msk.f32.mxu0 %vm672_vm0, %v673_v1  ;;  %536 = vmatpush3.bf16.msra.mxu0 %v535_v36  ;;  %v550_v50 = vpack.c.bf16 %v85_v49, %v84_v48  ;;  %v87_v52 = vld [vmem:[#allocation7 + $0x108] sm:$0xff]  ;;  %v90_v57 = vld [vmem:[#allocation7 + $0x120] sm:$0xff]  ;;  %v88_v63 = vld [vmem:[#allocation7 + $0x110] sm:$0xff]  ;;  %vm351_vm5 = vcmp.eq.s32.totalorder %v350_v33, 0 }
  0x43   :  { %518 = vmatpush3.bf16.msra.mxu1 %v517_v17  ;;  %537 = vmatprep.subr.bf16.mxu0 %v671_v0  ;;  %v553_v53 = vpack.c.bf16 %v87_v52, %v86_v51  ;;  %v94_v58 = vrot.slane %v90_v57, %v93_v56  ;;  %v89_v1 = vld [vmem:[#allocation7 + $0x118] sm:$0xff]  ;;  %v173_v5 = vrot.slane %v90_v57, %v172_v4  ;;  %v323_v8 = vrot.slane %v90_v57, 1 }
  0x44   :  { %519 = vmatprep.subr.bf16.mxu1 %v671_v0  ;;  %v556_v2 = vpack.c.bf16 %v89_v1, %v88_v63  ;;  %v343_v9 = vadd.f32 1.4189385, %v90_v57  ;;  %v318_v12 = vmul.f32 -2.0, %v90_v57  ;;  %v247_v16 = vrot.slane %v90_v57, %v246_v14  ;;  %v53_v19 = vld [vmem:[#allocation5] sm:$0xff] }
  0x45   :  { %v334_v18 = vadd.f32 0.9189385, %v90_v57 }
  0x46   :  { %539 = vmatpush3.bf16.msra.mxu0 %v538_v38  ;;  %v344_v10 = vmul.f32 %v343_v9, %v323_v8  ;;  %v319_v13 = vmul.f32 1.442695, %v318_v12 }
  0x47   :  { %521 = vmatpush3.bf16.msra.mxu1 %v520_v20  ;;  %540 = vmatprep.subr.bf16.mxu0 %v671_v0 }
  0x48   :  { %522 = vmatprep.subr.bf16.mxu1 %v671_v0  ;;  %v346_v11 = vsel %vm345_vm2, %v344_v10, 0.0  ;;  %570 = vpow2.f32 %v319_v13 }
  0x49   :  { %347 = vadd.xlane.f32.xlu0 %v346_v11 }
  0x4a   :  { %542 = vmatpush3.bf16.msra.mxu0 %v541_v41 }
  0x4b   :  { %524 = vmatpush3.bf16.msra.mxu1 %v523_v23  ;;  %543 = vmatprep.subr.bf16.mxu0 %v671_v0 }
  0x4c   :  { %525 = vmatprep.subr.bf16.mxu1 %v671_v0 }
  0x4e   :  { %545 = vmatpush3.bf16.msra.mxu0 %v544_v44 }
  0x4f   :  { %527 = vmatpush3.bf16.msra.mxu1 %v526_v26  ;;  %546 = vmatprep.subr.bf16.mxu0 %v671_v0  ;;  %v335_v26 = vmul.f32 %v334_v18, %v323_v8 }
  0x50   :  { %528 = vmatprep.subr.bf16.mxu1 %v671_v0 }
  0x51   :  { %v339_v30 = vrot.slane %v335_v26, %v331_v24 }
  0x52   :  { %548 = vmatpush3.bf16.msra.mxu0 %v547_v47  ;;  %v571_v15 = vpop.eup %570 }
  0x53   :  { %530 = vmatpush3.bf16.msra.mxu1 %v529_v29  ;;  %549 = vmatprep.subr.bf16.mxu0 %v671_v0  ;;  %v321_v17 = vmul.f32 0.5, %v571_v15 }
  0x54   :  { %531 = vmatprep.subr.bf16.mxu1 %v671_v0 }
  0x55   :  { %v325_v23 = vmul.f32 %v323_v8, %v321_v17 }
  0x56   :  { %551 = vmatpush3.bf16.msra.mxu0 %v550_v50 }
  0x57   :  { %533 = vmatpush3.bf16.msra.mxu1 %v532_v32  ;;  %552 = vmatprep.subr.bf16.mxu0 %v671_v0  ;;  %v332_v28 = vrot.slane %v325_v23, %v331_v24 }
  0x5a   :  { %554 = vmatpush3.bf16.msra.mxu0 %v553_v53 }
  0x5b   :  { %555 = vmatprep.subr.bf16.mxu0 %v671_v0 }
  0x5e   :  { %557 = vmatpush3.bf16.msra.mxu0 %v556_v2 }
  0xd6   :  { %v348_v34 = vpop.xlane.xlu0 %347 }
  0xd7   :  { %v357_v35 = vrot.slane %v348_v34, %v331_v24 }
  0xd9   :  { %v358_v36 = vsel %vm353_vm3, %v357_v35, 0.0 }
 0x114   :  { %v165_v59 = vpop.f32.mrb[0].mxu0 }
 0x115   :  { %v166_v60 = vadd.f32 %v165_v59, %v94_v58  ;;  %v433_v61 = vpop.f32.mrb[1].mxu0 }
 0x117   :  { %v169_v62 = vmax.f32 %v166_v60, 0.0 }
 0x119   :  { %467 = vmatmul.mubr.f32.vlgmr.msra.gmra.mrb[0].mxu1 %v169_v62 }
 0x1ec   :  { %v240_v0 = vpop.f32.mrb[0].mxu1 }
 0x1ed   :  { %v241_v6 = vadd.f32 %v240_v0, %v173_v5  ;;  %v468_v7 = vpop.f32.mrb[1].mxu1 }
 0x1ef   :  { %362 = vperm.xlu1 %568, %v241_v6   ;;  %502 = vmatmul.mubr.f32.vlgmr.msra.gmra.mrb[2].mxu0 %v241_v6 }
 0x26e   :  { %v363_v38 = vpop.permute.xlu1 %362 }
 0x2c2   :  { %v314_v20 = vpop.f32.mrb[2].mxu0 }
 0x2c3   :  { %v315_v21 = vadd.f32 %v314_v20, %v247_v16  ;;  %v503_v22 = vpop.f32.mrb[3].mxu0 }
 0x2c5   :  { %v326_v25 = vsub.f32 %v53_v19, %v315_v21 }
 0x2c7   :  { %v327_v27 = vmul.f32 %v326_v25, %v326_v25 }
 0x2c9   :  { %v328_v29 = vsub.f32 0.0, %v327_v27 }
 0x2cb   :  { %v333_v31 = vmul.f32 %v332_v28, %v328_v29 }
 0x2cd   :  { %v340_v32 = vsub.f32 %v333_v31, %v339_v30 }
 0x2cf   :  { %341 = vadd.xlane.f32.xlu0 %v340_v32 }
 0x35c   :  { %v342_v37 = vpop.xlane.xlu0 %341 }
 0x35d   :  { %v359_v39 = vsel %vm352_vm4, %v342_v37, %v358_v36 }
 0x35e   :  { %v365_v40 = vsel %vm351_vm5, %v363_v38, %v359_v39 }
 0x35f   :  { %366 = vst [vmem:[#allocation8] sm:$0xff] %v365_v40 }
 0x360   :  { %649 = shalt.err (!%p646_p0)
}
 0x361   :  { %s650_s25 = scalar_lea.hbm %s768_s3, 128 }
 0x362   :  { %p651_p1 = scmp.ne.s32.totalorder %s768_s3, %s650_s25  ;;  %p654_p2 = scmp.lt.u32.totalorder %s650_s25, %s768_s3 }
 0x364   :  { %p656_p3 = pnand %p654_p2, %p651_p1 }
 0x366   :  { %659 = shalt.err (!%p656_p3)
}
 0x367   :  { %376 = dma.vmem_to_hbm [thread:$0]  %s374_s21, 128, %s768_s3, [#allocation4]  }
 0x368   :  { %664 = dma.done.wait [#allocation4], 128  }
 0x369   :  { %665 = vsyncadd [#allocation4], 4294967168 }
 0x36a   :  { %380 = vsyncpa [#allocation3], 1 }
 0x36b   :  { %381 = vsyncpa [#allocation6], 1 }
 0x36c   :  { %382 = vsyncpa [#allocation4], 1 }

</bundles_post_ra>
